<compile_context>
chip_gen: v7x
topology: tpu7x:2x2x1
jax: 0.10.0
libtpu: 0.0.40
codegen_flags: <defaults>
</compile_context>

<pallas_src>
import functools

import jax
import jax.numpy as jnp
from jax.experimental import pallas as pl
from jax.experimental.pallas import tpu as pltpu


def _chan_contract_kernel(x_ref, w_ref, o_ref, *, c1):
    # x_ref : (2, 1, c1, TKL)  stacked re/im of fft2(padded x) for one batch element
    # w_ref : (c2, c1, TKL)    real frequency-domain weight (VMEM-resident across N)
    # o_ref : (2, 1, c2, TKL)  stacked re/im of the contraction over input channels
    x = x_ref[...]
    w = w_ref[...]
    acc = jnp.zeros(o_ref.shape, jnp.float32)
    # Unrolled accumulation over input channels: keeps live values to a handful of
    # vregs (no (c1 x c2 x TKL) intermediate) and is pure VPU work by construction.
    # TODO(synk): for very large c1 this should become a chunked fori_loop or an
    # extra "arbitrary" grid axis with an accumulator scratch.
    for n in range(c1):
        acc = acc + x[:, :, n, :][:, :, None, :] * w[:, n, :][None, None, :, :]
    o_ref[...] = acc


def channel_contract(x_ri, weight, *, vmem_block_budget=32 * 1024 * 1024):
    """out[r, i, j, l] = sum_n x_ri[r, i, n, l] * weight[j, n, l]   (r = re/im)."""
    _, N, c1, KL = x_ri.shape
    c2 = weight.shape[0]

    # Lane-tile size: whole flattened spectrum if its double-buffered blocks fit the
    # VMEM budget, otherwise 128-lane-multiple slabs (KL zero-padded to a multiple).
    bytes_per_lane = 4 * (2 * c1 + c1 * c2 + 2 * c2) * 2  # f32; x, w, out; x2 buffers
    max_lanes = max(128, vmem_block_budget // bytes_per_lane)
    if KL <= max_lanes:
        tkl, kl_pad = KL, KL
    else:
        tkl = (max_lanes // 128) * 128
        kl_pad = pl.cdiv(KL, tkl) * tkl
        x_ri = jnp.pad(x_ri, ((0, 0), (0, 0), (0, 0), (0, kl_pad - KL)))
        weight = jnp.pad(weight, ((0, 0), (0, 0), (0, kl_pad - KL)))
    num_kl_tiles = kl_pad // tkl

    out = pl.pallas_call(
        functools.partial(_chan_contract_kernel, c1=c1),
        # N is the fastest grid axis and the weight block index depends only on the
        # KL-tile index -> each weight tile is DMA'd once and reused for all N.
        grid=(num_kl_tiles, N),
        in_specs=[
            pl.BlockSpec((2, 1, c1, tkl), lambda s, i: (0, i, 0, s)),
            pl.BlockSpec((c2, c1, tkl), lambda s, i: (0, 0, s)),
        ],
        out_specs=pl.BlockSpec((2, 1, c2, tkl), lambda s, i: (0, i, 0, s)),
        out_shape=jax.ShapeDtypeStruct((2, N, c2, kl_pad), jnp.float32),
        compiler_params=pltpu.CompilerParams(
            dimension_semantics=("parallel", "parallel"),
            vmem_limit_bytes=64 * 1024 * 1024,
        ),
    )(x_ri, weight)

    if kl_pad != KL:
        out = out[..., :KL]
    return out


def deconv2dfft_forward(x, weight, kernel_size):
    w_k = h_k = kernel_size
    wk2, hk2 = (w_k - 1) // 2, (h_k - 1) // 2

    # F.pad(x, (wk2, wk2 + w_k - 1, hk2, hk2 + h_k - 1))
    x = jnp.pad(x, ((0, 0), (0, 0),
                    (hk2, hk2 + h_k - 1),
                    (wk2, wk2 + w_k - 1)))

    # TODO(synk): fft2/ifft2 have no Pallas TPU primitive; computed with XLA's FFT.
    image_fft = jnp.fft.fft2(x)

    N, c1, P, _ = x.shape
    c2 = weight.shape[0]
    KL = P * P

    # Stack re/im -> one DMA stream; flatten spatial -> lane-dense layout.
    x_ri = jnp.stack([jnp.real(image_fft), jnp.imag(image_fft)], axis=0)
    x_ri = x_ri.astype(jnp.float32).reshape(2, N, c1, KL)
    w_flat = weight.astype(jnp.float32).reshape(c2, c1, KL)

    out_ri = channel_contract(x_ri, w_flat)            # (2, N, c2, KL)
    out_ri = out_ri.reshape(2, N, c2, P, P)
    deconv_fft = jax.lax.complex(out_ri[0], out_ri[1])
    deconv = jnp.fft.ifft2(deconv_fft)
    if wk2 > 0:  # guard the [0:-0] empty-slice case for kernel_size == 1
        deconv = deconv[:, :, wk2:-wk2, wk2:-wk2]
    return deconv


if __name__ == "__main__":
    # Module config (small, consistent with Deconv2dfft.__init__)
    N, c1, c2 = 2, 4, 4
    image_size, kernel_size = 16, 3
    wk2 = (kernel_size - 1) // 2
    w = image_size + 2 * wk2 - 1
    P = kernel_size + w  # padded / weight spatial size = image_size + 2*kernel_size - 2

    key = jax.random.PRNGKey(0)
    kx, kw = jax.random.split(key)
    x = jax.random.normal(kx, (N, c1, image_size, image_size), dtype=jnp.float32)
    # Deterministic synthetic weight (module inits to zeros; zeros give a trivial test)
    weight = jax.random.normal(kw, (c2, c1, P, P), dtype=jnp.float32)

    out = deconv2dfft_forward(x, weight, kernel_size)
    out = jax.block_until_ready(out)

    # Shape check: output spatial = P - 2*wk2 = image_size + kernel_size - 1
    expected_hw = image_size + kernel_size - 1
    assert out.shape == (N, c2, expected_hw, expected_hw), out.shape
    assert jnp.iscomplexobj(out)

    # Pure-JAX reference check of the whole forward pass
    x_pad = jnp.pad(x, ((0, 0), (0, 0),
                        (wk2, wk2 + kernel_size - 1),
                        (wk2, wk2 + kernel_size - 1)))
    ref_fft = jnp.einsum('inkl,jnkl->ijkl', jnp.fft.fft2(x_pad),
                         weight.astype(jnp.complex64))
    ref = jnp.fft.ifft2(ref_fft)[:, :, wk2:-wk2, wk2:-wk2]
    err = float(jnp.max(jnp.abs(out - ref)))
    scale = float(jnp.max(jnp.abs(ref))) + 1e-6
    assert err / scale < 1e-4, (err, scale)

    print("KERNEL_OK")
</pallas_src>

<mosaic_0001>
module attributes {stable_mosaic.version = 11 : i64} {
  func.func @_chan_contract_kernel(%arg0: i32, %arg1: i32, %arg2: memref<2x1x4x400xf32, #tpu.memory_space<vmem>>, %arg3: memref<4x4x400xf32, #tpu.memory_space<vmem>>, %arg4: memref<2x1x4x400xf32, #tpu.memory_space<vmem>>) attributes {dimension_semantics = [#tpu.dimension_semantics<parallel>, #tpu.dimension_semantics<parallel>], iteration_bounds = array<i64: 1, 2>, scalar_prefetch = 0 : i64, scratch_operands = 0 : i64, tpu.core_type = #tpu.core_type<tc>, window_params = [{transform_indices = @transform_0, window_bounds = array<i64: 2, 1, 4, 400>}, {transform_indices = @transform_1, window_bounds = array<i64: 4, 4, 400>}, {transform_indices = @transform_2, window_bounds = array<i64: 2, 1, 4, 400>}]} {
    %c0 = arith.constant 0 : index
    %c0_0 = arith.constant 0 : index
    %c0_1 = arith.constant 0 : index
    %c0_2 = arith.constant 0 : index
    %0 = vector.load %arg2[%c0, %c0_0, %c0_1, %c0_2] : memref<2x1x4x400xf32, #tpu.memory_space<vmem>>, vector<2x1x4x400xf32>
    %c0_3 = arith.constant 0 : index
    %c0_4 = arith.constant 0 : index
    %c0_5 = arith.constant 0 : index
    %1 = vector.load %arg3[%c0_3, %c0_4, %c0_5] : memref<4x4x400xf32, #tpu.memory_space<vmem>>, vector<4x4x400xf32>
    %cst = arith.constant 0.000000e+00 : f32
    %2 = vector.broadcast %cst : f32 to vector<2x1x4x400xf32>
    %3 = vector.extract_strided_slice %0 {offsets = [0, 0, 0, 0], sizes = [2, 1, 1, 400], strides = [1, 1, 1, 1]} : vector<2x1x4x400xf32> to vector<2x1x1x400xf32>
    %4 = vector.shape_cast %3 : vector<2x1x1x400xf32> to vector<2x1x400xf32>
    %5 = vector.shape_cast %4 : vector<2x1x400xf32> to vector<2x1x1x400xf32>
    %6 = vector.extract_strided_slice %1 {offsets = [0, 0, 0], sizes = [4, 1, 400], strides = [1, 1, 1]} : vector<4x4x400xf32> to vector<4x1x400xf32>
    %7 = vector.shape_cast %6 : vector<4x1x400xf32> to vector<4x400xf32>
    %8 = vector.shape_cast %7 : vector<4x400xf32> to vector<1x1x4x400xf32>
    %9 = vector.broadcast %5 : vector<2x1x1x400xf32> to vector<2x1x4x400xf32>
    %10 = vector.broadcast %8 : vector<1x1x4x400xf32> to vector<2x1x4x400xf32>
    %11 = arith.mulf %9, %10 : vector<2x1x4x400xf32>
    %12 = arith.addf %2, %11 : vector<2x1x4x400xf32>
    %13 = vector.extract_strided_slice %0 {offsets = [0, 0, 1, 0], sizes = [2, 1, 1, 400], strides = [1, 1, 1, 1]} : vector<2x1x4x400xf32> to vector<2x1x1x400xf32>
    %14 = vector.shape_cast %13 : vector<2x1x1x400xf32> to vector<2x1x400xf32>
    %15 = vector.shape_cast %14 : vector<2x1x400xf32> to vector<2x1x1x400xf32>
    %16 = vector.extract_strided_slice %1 {offsets = [0, 1, 0], sizes = [4, 1, 400], strides = [1, 1, 1]} : vector<4x4x400xf32> to vector<4x1x400xf32>
    %17 = vector.shape_cast %16 : vector<4x1x400xf32> to vector<4x400xf32>
    %18 = vector.shape_cast %17 : vector<4x400xf32> to vector<1x1x4x400xf32>
    %19 = vector.broadcast %15 : vector<2x1x1x400xf32> to vector<2x1x4x400xf32>
    %20 = vector.broadcast %18 : vector<1x1x4x400xf32> to vector<2x1x4x400xf32>
    %21 = arith.mulf %19, %20 : vector<2x1x4x400xf32>
    %22 = arith.addf %12, %21 : vector<2x1x4x400xf32>
    %23 = vector.extract_strided_slice %0 {offsets = [0, 0, 2, 0], sizes = [2, 1, 1, 400], strides = [1, 1, 1, 1]} : vector<2x1x4x400xf32> to vector<2x1x1x400xf32>
    %24 = vector.shape_cast %23 : vector<2x1x1x400xf32> to vector<2x1x400xf32>
    %25 = vector.shape_cast %24 : vector<2x1x400xf32> to vector<2x1x1x400xf32>
    %26 = vector.extract_strided_slice %1 {offsets = [0, 2, 0], sizes = [4, 1, 400], strides = [1, 1, 1]} : vector<4x4x400xf32> to vector<4x1x400xf32>
    %27 = vector.shape_cast %26 : vector<4x1x400xf32> to vector<4x400xf32>
    %28 = vector.shape_cast %27 : vector<4x400xf32> to vector<1x1x4x400xf32>
    %29 = vector.broadcast %25 : vector<2x1x1x400xf32> to vector<2x1x4x400xf32>
    %30 = vector.broadcast %28 : vector<1x1x4x400xf32> to vector<2x1x4x400xf32>
    %31 = arith.mulf %29, %30 : vector<2x1x4x400xf32>
    %32 = arith.addf %22, %31 : vector<2x1x4x400xf32>
    %33 = vector.extract_strided_slice %0 {offsets = [0, 0, 3, 0], sizes = [2, 1, 1, 400], strides = [1, 1, 1, 1]} : vector<2x1x4x400xf32> to vector<2x1x1x400xf32>
    %34 = vector.shape_cast %33 : vector<2x1x1x400xf32> to vector<2x1x400xf32>
    %35 = vector.shape_cast %34 : vector<2x1x400xf32> to vector<2x1x1x400xf32>
    %36 = vector.extract_strided_slice %1 {offsets = [0, 3, 0], sizes = [4, 1, 400], strides = [1, 1, 1]} : vector<4x4x400xf32> to vector<4x1x400xf32>
    %37 = vector.shape_cast %36 : vector<4x1x400xf32> to vector<4x400xf32>
    %38 = vector.shape_cast %37 : vector<4x400xf32> to vector<1x1x4x400xf32>
    %39 = vector.broadcast %35 : vector<2x1x1x400xf32> to vector<2x1x4x400xf32>
    %40 = vector.broadcast %38 : vector<1x1x4x400xf32> to vector<2x1x4x400xf32>
    %41 = arith.mulf %39, %40 : vector<2x1x4x400xf32>
    %42 = arith.addf %32, %41 : vector<2x1x4x400xf32>
    %c0_6 = arith.constant 0 : index
    %c0_7 = arith.constant 0 : index
    %c0_8 = arith.constant 0 : index
    %c0_9 = arith.constant 0 : index
    %43 = vector.load %arg4[%c0_6, %c0_7, %c0_8, %c0_9] : memref<2x1x4x400xf32, #tpu.memory_space<vmem>>, vector<2x1x4x400xf32>
    tpu.vector_store %arg4[%c0_6, %c0_7, %c0_8, %c0_9], %42 {strides = array<i32>} : memref<2x1x4x400xf32, #tpu.memory_space<vmem>>, vector<2x1x4x400xf32>,
    return
  }
  func.func @transform_0(%arg0: i32, %arg1: i32) -> (i32, i32, i32, i32) {
    %c0_i32 = arith.constant 0 : i32
    %c0_i32_0 = arith.constant 0 : i32
    %c0_i32_1 = arith.constant 0 : i32
    return %c0_i32, %arg1, %c0_i32_0, %arg0 : i32, i32, i32, i32
  }
  func.func @transform_1(%arg0: i32, %arg1: i32) -> (i32, i32, i32) {
    %c0_i32 = arith.constant 0 : i32
    %c0_i32_0 = arith.constant 0 : i32
    %c0_i32_1 = arith.constant 0 : i32
    return %c0_i32, %c0_i32_0, %arg0 : i32, i32, i32
  }
  func.func @transform_2(%arg0: i32, %arg1: i32) -> (i32, i32, i32, i32) {
    %c0_i32 = arith.constant 0 : i32
    %c0_i32_0 = arith.constant 0 : i32
    %c0_i32_1 = arith.constant 0 : i32
    return %c0_i32, %arg1, %c0_i32_0, %arg0 : i32, i32, i32, i32
  }
}

</mosaic_0001>

<bundles_post_ra>
// kernel: tpu_custom_call.1
= control target key start
LH: loop header
LB: loop body
LE: loop exit
PB: predicated region body
PF: predicated region fallthrough
CT: control target
= control target key end

     0   :  { %7 = vsyncpa [#allocation3], 0  ;;  %s1919_s0 = inlined_call_operand.hbm [shape: f32[2,2,4,400], index: 0, kind: input, shape index: {}]   ;;  %s1920_s1 = inlined_call_operand.hbm [shape: f32[4,4,400], index: 1, kind: input, shape index: {}]   ;;  %s1921_s2 = inlined_call_operand.hbm [shape: f32[2,2,4,400], index: 2, kind: output, shape index: {}]  }
   0x1   :  { %9 = vsyncpa [#allocation3 + $0x1], 0 }
   0x2   :  { %10 = vsyncpa [#allocation6], 0 }
   0x3   :  { %11 = vsyncpa [#allocation4], 0 }
   0x4   :  { %13 = vsyncpa [#allocation4 + $0x1], 0  ;;  %s1311_s9 = smov 0   ;;  %s1313_s10 = smov 0  }
   0x5   :  { %s1315_s11 = smov 0   ;;  %s1317_s12 = smov 0  }
   0x6   :  { %s1319_s13 = smov 0   ;;  %s1321_s14 = smov 0  }
   0x7 LB: > { %s1043_s15 = sadd.s32 4294967295, %s1285_s14   ;;  %s1044_s16 = sadd.s32 4294967294, %s1285_s14   ;;  %s1285_s14 = sphi %s1321_s14, %s19_s14   ;;  %s1281_s13 = sphi %s1319_s13, %s1949_s13   ;;  %s1277_s12 = sphi %s1317_s12, %s1948_s12   ;;  %s1273_s11 = sphi %s1315_s11, %s1947_s11   ;;  %s1269_s10 = sphi %s1313_s10, %s1946_s10   ;;  %s1265_s9 = sphi %s1311_s9, %s1945_s9  }
   0x8   : > { %p47_p0 = scmp.ne.s32.totalorder %s1273_s11, %s1269_s10  ;;  %p48_p1 = scmp.eq.s32.totalorder %s1285_s14, 0 }
   0x9   : > { %p53_p2 = scmp.ne.s32.totalorder %s1269_s10, %s1265_s9  ;;  %p1348_p3 = scmp.eq.s32.totalorder %s1043_s15, 0 }
   0xa   : > { %p1352_p4 = por %p48_p1, %p47_p0  ;;  %p105_p5 = scmp.eq.s32.totalorder %s1043_s15, 1 }
   0xb   : > { %s1928_s17 = scalar_select %p1348_p3, 1, 0 }
   0xc   : > { %p1358_p6 = por %p1348_p3, %p53_p2  ;;  %p111_p7 = scmp.eq.s32.totalorder %s1044_s16, 1 }
   0xd   : > { %p1362_p8 = por %p105_p5, %p47_p0  ;;  %p1045_p9 = scmp.ge.s32.totalorder %s1285_s14, 1 }
   0xe   : > { %s1930_s19 = scalar_select %p1358_p6, 1, 0 }
   0xf   : > { %s1931_s20 = scalar_select %p1362_p8, 1, 0 }
  0x10   : > { %p1367_p10 = por %p111_p7, %p53_p2  ;;  %p118_p11 = scmp.lt.s32.totalorder %s1285_s14, 3 }
  0x11   : > { %s1287_s23 = smov [#allocation5]   ;;  %p1083_p1 = scmp.lt.s32.totalorder %s1285_s14, 2 }
  0x12   : > { %s1932_s21 = scalar_select %p1367_p10, 1, 0 }
  0x13   : > { %p1372_p12 = pnand %p1045_p9, %p118_p11  ;;  %s133_s24 = sshll.u32 %s1287_s23, 4  ;;  %s1376_s24 = int_to_ptr.vmem [resolvable:$true] %s133_s24 }
  0x14   : > { %p1390_p2 = pnand %p1083_p1, %p1352_p4  ;;  %s28_s27 = sadd.s32 1, %s1281_s13 }
  0x15   : > { %s1933_s22 = scalar_select %p1372_p12, 1, 0 }
  0x16   : > { %p1070_p13 = pneg %p1372_p12  ;;  %s1141_s30 = scalar_lea.hbm %s1920_s1, 1024 }
  0x17   : > { %s1935_s26 = scalar_select %p1390_p2, 1, 0 }
  0x18   : > { %p1384_p5 = pnand %p1070_p13, %p1348_p3  ;;  %p1142_p7 = scmp.ne.s32.totalorder %s1920_s1, %s1141_s30 }
  0x19   : > { %p1148_p4 = scmp.lt.u32.totalorder %s1141_s30, %s1920_s1 }
  0x1a   : > { %p1143_p9 = pneg %p1384_p5 }
  0x1c   : > { %p1144_p11 = pnand %p1143_p9, %p1142_p7 }
  0x1e   : > { %p1145_p13 = pneg %p1144_p11 }
  0x20   : > { %p1150_p1 = pnand %p1148_p4, %p1145_p13 }
  0x22   : > { %1153 = shalt.err (!%p1150_p1)
}
  0x23   : > { %s1154_s7 = scalar_lea.vmem %s1376_s24, 1024  ;;  %p1162_p3 = scmp.lt.s32.totalorder %s1376_s24, %s1376_s24 }
  0x24   : > { %p1155_p0 = scmp.ne.s32.totalorder %s1376_s24, %s1154_s7  ;;  %p1163_p6 = scmp.lt.s32.totalorder %s1154_s7, %s1154_s7 }
  0x26   : > { %p1157_p10 = pnand %p1155_p0, %p1143_p9  ;;  %p1164_p12 = por %p1163_p6, %p1162_p3 }
  0x28   : > { %p1158_p8 = pneg %p1157_p10 }
  0x2a   : > { %p1165_p2 = pnand %p1164_p12, %p1158_p8 }
  0x2c   : > { %1168 = shalt.err (!%p1165_p2)
}
  0x2d   : > { %s1288_s8 = smov 256   ;;  %s1289_s15 = smov 16  }
  0x2e   : > { %1073 = dma.hbm_to_vmem [thread:$0]  (!%p1384_p5), %s1920_s1, 1024, %s1376_s24, [#allocation6], %s1288_s8, %s1288_s8, %s1289_s15  }
  0x2f   : > { %p29_p3 = scmp.ge.s32.totalorder %s28_s27, 2  ;;  %s40_s23 = sadd.s32 1, %s1273_s11 }
  0x30   : > { %s147_s28 = sand.u32 1, %s1273_s11   ;;  %s1060_s3 = sshll.u32 %s1281_s13, 8 }
  0x31   : > { %s1951_s27 = smov (%p29_p3, %s28_s27), 0  ;;  %s1048_s29 = sshll.u32 %s147_s28, 5 }
  0x32   : > { %s35_s30 = ssub.s32 %s1281_s13, %s1951_s27  ;;  %s1429_s5 = scalar_lea.hbm %s1919_s0, %s1060_s3 }
  0x33   : > { %p38_p6 = scmp.eq.s32.totalorder %s35_s30, 0  ;;  %s151_s24 = scalar_lea.vmem [#allocation2], %s1048_s29 }
  0x34   : > { %s160_s6 = sshll.u32 %s151_s24, 4  ;;  %s1436_s16 = scalar_lea.sflag [#allocation3], %s147_s28  ;;  %s1434_s6 = int_to_ptr.vmem [resolvable:$true] %s160_s6 }
  0x35   : > { %s1432_s7 = scalar_select %p38_p6, %s1273_s11, %s40_s23  }
  0x36   : > { %s1169_s18 = scalar_lea.hbm %s1429_s5, 512  ;;  %p1936_p10 = scmp.ne.s32.totalorder %s1935_s26, 0 }
  0x37   : > { %p1170_p8 = scmp.ne.s32.totalorder %s1429_s5, %s1169_s18  ;;  %s1174_s25 = scalar_lea.hbm %s1919_s0, 1024 }
  0x38   : > { %p1171_p12 = pneg %p1936_p10  ;;  %p1175_p2 = scmp.lt.u32.totalorder %s1429_s5, %s1919_s0 }
  0x39   : > { %p1176_p7 = scmp.lt.u32.totalorder %s1174_s25, %s1169_s18  ;;  %p1178_p11 = scmp.lt.u32.totalorder %s1169_s18, %s1429_s5 }
  0x3a   : > { %p1172_p0 = pnand %p1171_p12, %p1170_p8 }
  0x3b   : > { %p1177_p9 = por %p1176_p7, %p1175_p2 }
  0x3c   : > { %p1173_p5 = pneg %p1172_p0 }
  0x3d   : > { %p1179_p13 = por %p1178_p11, %p1177_p9 }
  0x3f   : > { %p1180_p4 = pnand %p1179_p13, %p1173_p5 }
  0x41   : > { %1183 = shalt.err (!%p1180_p4)
}
  0x42   : > { %s1184_s23 = scalar_lea.vmem %s1434_s6, 512  ;;  %s1290_s28 = smov [#allocation2]  }
  0x43   : > { %p1185_p1 = scmp.ne.s32.totalorder %s1434_s6, %s1184_s23  ;;  %s1189_s24 = sshll.u32 %s1290_s28, 4  ;;  %s1190_s24 = int_to_ptr.vmem [resolvable:$false] %s1189_s24 }
  0x44   : > { %s1191_s30 = scalar_lea.vmem %s1190_s24, 1024  ;;  %p1192_p8 = scmp.lt.s32.totalorder %s1434_s6, %s1190_s24 }
  0x45   : > { %p1187_p3 = pnand %p1185_p1, %p1171_p12  ;;  %p1193_p0 = scmp.lt.s32.totalorder %s1191_s30, %s1184_s23 }
  0x47   : > { %p1188_p6 = pneg %p1187_p3  ;;  %p1194_p2 = por %p1193_p0, %p1192_p8 }
  0x49   : > { %p1195_p7 = pnand %p1194_p2, %p1188_p6 }
  0x4b   : > { %1198 = shalt.err (!%p1195_p7)
}
  0x4c   : > { %s1291_s18 = smov 512   ;;  %p1937_p12 = scmp.ne.s32.totalorder %s1933_s22, 0 }
  0x4d   : > { %1077 = dma.hbm_to_vmem [thread:$0]  (!%p1936_p10), %s1429_s5, 512, %s1434_s6, %s1436_s16, %s1291_s18, %s1288_s8, %s1289_s15  }
  0x4e   : > { %172 = sbr.rel (%p1937_p12) target bundleno = 176 (0xb0), region = 28  ;;  %s1469_s3 = sand.u32 (!%p1937_p12), 1, %s1269_s10  }
  0x4f   : > { %s1052_s25 = sshll.u32 (!%p1937_p12), %s1469_s3, 5  ;;  %s175_s29 = scalar_lea.sflag (!%p1937_p12), [#allocation3], %s1469_s3 }
  0x50   : > { %s1475_s26 = scalar_lea.vmem (!%p1937_p12), [#allocation2], %s1052_s25  ;;  %p1938_p5 = scmp.ne.s32.totalorder (!%p1937_p12), %s1930_s19, 0 }
  0x55   : > { %1252 = dma.done.wait (%p1938_p5), %s175_s29, 512  }
  0x56   : > { %1254 = vsyncadd (%p1938_p5), %s175_s29, 4294966784  ;;  %p1939_p10 = scmp.ne.s32.totalorder %s1928_s17, 0 }
  0x58   : > { %1256 = dma.done.wait (%p1939_p10), [#allocation6], 1024  }
  0x59   : > { %1258 = vsyncadd (%p1939_p10), [#allocation6], 4294966272  ;;  %v222_v0 = vlaneseq  ;;  %vm366_vm0 = vcmask 1041409   ;;  %vm368_vm1 = vcmask 1042434   ;;  %vm370_vm2 = vcmask 1043459   ;;  %v1496_v7 = vld [vmem:[%s1475_s26] sm:$0xff] }
  0x5a   : > { %v1498_v8 = vld [vmem:[#allocation5] sm:$0xff]  ;;  %v1500_v9 = vld [vmem:[#allocation5 + $0x10] sm:$0xff]  ;;  %s1703_s17 = scalar_lea.vmem [#allocation7], %s1052_s25  ;;  %vm922_vm3 = vcmask 1043456   ;;  %vm923_vm4 = vcmask 130052   ;;  %s1061_s22 = sshll.u32 %s1277_s12, 8 }
  0x5b   : > { %v223_v1 = vshrl.u32 %v222_v0, 7  ;;  %v1508_v13 = vld [vmem:[#allocation5 + $0x20] sm:$0xff]  ;;  %v1510_v14 = vld [vmem:[#allocation5 + $0x30] sm:$0xff]  ;;  %vm1819_vm5 = vmor %vm923_vm4, %vm922_vm3  ;;  %s944_s19 = sshll.u32 %s1703_s17, 4  ;;  %s1867_s5 = scalar_lea.hbm %s1921_s2, %s1061_s22  ;;  %s1862_s19 = int_to_ptr.vmem [resolvable:$true] %s944_s19 }
  0x5c   : > { %s929_s6 = scalar_lea.sflag [#allocation4], %s1469_s3  ;;  %s1199_s16 = scalar_lea.vmem %s1862_s19, 512 }
  0x5d   : > { %v1485_v2 = vsub.s32 0, %v223_v1  ;;  %v1487_v3 = vsub.s32 4, %v223_v1  ;;  %v1489_v4 = vsub.s32 1, %v223_v1  ;;  %v1491_v5 = vsub.s32 5, %v223_v1  ;;  %p1200_p9 = scmp.ne.s32.totalorder %s1862_s19, %s1199_s16  ;;  %p1942_p11 = scmp.ne.s32.totalorder %s1931_s20, 0 }
  0x5e   : > { %v1493_v6 = vsub.s32 2, %v223_v1  ;;  %v1502_v10 = vsub.s32 6, %v223_v1  ;;  %v1504_v11 = vsub.s32 3, %v223_v1  ;;  %v1506_v12 = vsub.s32 7, %v223_v1  ;;  %s1292_s12 = smov [#allocation7]  }
  0x5f   : > { %v225_v15 = vrot.slane %v1496_v7, %v1485_v2  ;;  %v229_v16 = vrot.slane %v1496_v7, %v1487_v3  ;;  %v305_v17 = vrot.slane %v1498_v8, %v1485_v2  ;;  %v309_v18 = vrot.slane %v1498_v8, %v1487_v3  ;;  %p1201_p13 = pnand %p1200_p9, %p1942_p11  ;;  %s1203_s4 = sshll.u32 %s1292_s12, 4  ;;  %s1204_s4 = int_to_ptr.vmem [resolvable:$false] %s1203_s4 }
  0x60   : > { %v321_v19 = vrot.slane %v1500_v9, %v1485_v2  ;;  %v325_v20 = vrot.slane %v1500_v9, %v1487_v3  ;;  %v337_v21 = vrot.slane %v1508_v13, %v1485_v2  ;;  %v341_v22 = vrot.slane %v1508_v13, %v1487_v3  ;;  %s1205_s23 = scalar_lea.vmem %s1204_s4, 1024  ;;  %p1206_p1 = scmp.lt.s32.totalorder %s1862_s19, %s1204_s4 }
  0x61   : > { %v265_v23 = vrot.slane %v225_v15, %v1485_v2  ;;  %v269_v24 = vrot.slane %v229_v16, %v1485_v2  ;;  %v353_v25 = vrot.slane %v1510_v14, %v1485_v2  ;;  %v357_v26 = vrot.slane %v1510_v14, %v1487_v3  ;;  %p1202_p4 = pneg %p1201_p13  ;;  %p1207_p3 = scmp.lt.s32.totalorder %s1205_s23, %s1199_s16 }
  0x62   : > { %v367_v27 = vsel %vm366_vm0, %v321_v19, %v305_v17  ;;  %v372_v28 = vsel %vm366_vm0, %v325_v20, %v309_v18  ;;  %v404_v29 = vrot.slane %v1496_v7, %v1489_v4  ;;  %v408_v30 = vrot.slane %v1496_v7, %v1491_v5 }
  0x63   : > { %v369_v31 = vsel %vm368_vm1, %v337_v21, %v367_v27  ;;  %v373_v32 = vsel %vm368_vm1, %v341_v22, %v372_v28  ;;  %v476_v33 = vrot.slane %v1498_v8, %v1489_v4  ;;  %v480_v34 = vrot.slane %v1498_v8, %v1491_v5  ;;  %p1208_p6 = por %p1207_p3, %p1206_p1 }
  0x64   : > { %v1547_v35 = vsel %vm370_vm2, %v353_v25, %v369_v31  ;;  %v1550_v36 = vsel %vm370_vm2, %v357_v26, %v373_v32  ;;  %v444_v37 = vrot.slane %v404_v29, %v1489_v4  ;;  %v448_v38 = vrot.slane %v408_v30, %v1489_v4  ;;  %v1625_v31 = vld [vmem:[%s1475_s26 + $0x8] sm:$0xff] }
  0x65   : > { %v385_v39 = vmul.f32 %v1547_v35, %v265_v23  ;;  %v386_v40 = vmul.f32 %v1550_v36, %v269_v24  ;;  %v492_v41 = vrot.slane %v1500_v9, %v1489_v4  ;;  %v496_v42 = vrot.slane %v1500_v9, %v1491_v5  ;;  %p1209_p8 = pnand %p1208_p6, %p1202_p4 }
  0x66   : > { %v508_v43 = vrot.slane %v1508_v13, %v1489_v4  ;;  %v512_v44 = vrot.slane %v1508_v13, %v1491_v5  ;;  %v524_v45 = vrot.slane %v1510_v14, %v1489_v4  ;;  %v528_v46 = vrot.slane %v1510_v14, %v1491_v5 }
  0x67   : > { %v537_v47 = vsel %vm366_vm0, %v492_v41, %v476_v33  ;;  %v540_v48 = vsel %vm366_vm0, %v496_v42, %v480_v34  ;;  %v572_v49 = vrot.slane %v1496_v7, %v1493_v6  ;;  %v576_v50 = vrot.slane %v1496_v7, %v1502_v10 }
  0x68   : > { %v538_v51 = vsel %vm368_vm1, %v508_v43, %v537_v47  ;;  %v541_v52 = vsel %vm368_vm1, %v512_v44, %v540_v48  ;;  %v644_v53 = vrot.slane %v1498_v8, %v1493_v6  ;;  %v648_v54 = vrot.slane %v1498_v8, %v1502_v10  ;;  %v1643_v43 = vld [vmem:[#allocation5 + $0x18] sm:$0xff]  ;;  %v1651_v47 = vld [vmem:[#allocation5 + $0x28] sm:$0xff] }
  0x69   : > { %v1581_v55 = vsel %vm370_vm2, %v524_v45, %v538_v51  ;;  %v1584_v56 = vsel %vm370_vm2, %v528_v46, %v541_v52  ;;  %v612_v57 = vrot.slane %v572_v49, %v1493_v6  ;;  %v616_v58 = vrot.slane %v576_v50, %v1493_v6  ;;  %v1653_v48 = vld [vmem:[#allocation5 + $0x38] sm:$0xff] }
  0x6a   : > { %v553_v59 = vmul.f32 %v1581_v55, %v444_v37  ;;  %v554_v60 = vmul.f32 %v1584_v56, %v448_v38  ;;  %v660_v61 = vrot.slane %v1500_v9, %v1493_v6  ;;  %v664_v62 = vrot.slane %v1500_v9, %v1502_v10  ;;  %v1635_v37 = vld [vmem:[#allocation5 + $0x8] sm:$0xff] }
  0x6b   : > { %v676_v63 = vrot.slane %v1508_v13, %v1493_v6  ;;  %v680_v0 = vrot.slane %v1508_v13, %v1502_v10  ;;  %v692_v1 = vrot.slane %v1510_v14, %v1493_v6  ;;  %v696_v15 = vrot.slane %v1510_v14, %v1502_v10 }
  0x6c   : > { %v561_v16 = vadd.f32 %v553_v59, %v385_v39  ;;  %v562_v17 = vadd.f32 %v554_v60, %v386_v40  ;;  %v705_v18 = vsel %vm366_vm0, %v660_v61, %v644_v53  ;;  %v708_v19 = vsel %vm366_vm0, %v664_v62, %v648_v54 }
  0x6d   : > { %v706_v20 = vsel %vm368_vm1, %v676_v63, %v705_v18  ;;  %v709_v21 = vsel %vm368_vm1, %v680_v0, %v708_v19  ;;  %v740_v22 = vrot.slane %v1496_v7, %v1504_v11  ;;  %v744_v23 = vrot.slane %v1496_v7, %v1506_v12 }
  0x6e   : > { %v1611_v24 = vsel %vm370_vm2, %v692_v1, %v706_v20  ;;  %v1614_v25 = vsel %vm370_vm2, %v696_v15, %v709_v21  ;;  %v812_v26 = vrot.slane %v1498_v8, %v1504_v11  ;;  %v816_v27 = vrot.slane %v1498_v8, %v1506_v12 }
  0x6f   : > { %v721_v28 = vmul.f32 %v1611_v24, %v612_v57  ;;  %v722_v29 = vmul.f32 %v1614_v25, %v616_v58  ;;  %v780_v30 = vrot.slane %v740_v22, %v1504_v11  ;;  %v784_v7 = vrot.slane %v744_v23, %v1504_v11 }
  0x70   : > { %v828_v32 = vrot.slane %v1500_v9, %v1504_v11  ;;  %v832_v33 = vrot.slane %v1500_v9, %v1506_v12  ;;  %v844_v34 = vrot.slane %v1508_v13, %v1504_v11  ;;  %v848_v8 = vrot.slane %v1508_v13, %v1506_v12 }
  0x71   : > { %v729_v38 = vadd.f32 %v721_v28, %v561_v16  ;;  %v730_v39 = vadd.f32 %v722_v29, %v562_v17  ;;  %v860_v40 = vrot.slane %v1510_v14, %v1504_v11  ;;  %v864_v41 = vrot.slane %v1510_v14, %v1506_v12 }
  0x72   : > { %v873_v42 = vsel %vm366_vm0, %v828_v32, %v812_v26  ;;  %v876_v9 = vsel %vm366_vm0, %v832_v33, %v816_v27  ;;  %v233_v44 = vrot.slane %v1625_v31, %v1485_v2  ;;  %v237_v13 = vrot.slane %v1625_v31, %v1487_v3 }
  0x73   : > { %v874_v45 = vsel %vm368_vm1, %v844_v34, %v873_v42  ;;  %v877_v46 = vsel %vm368_vm1, %v848_v8, %v876_v9  ;;  %v313_v14 = vrot.slane %v1635_v37, %v1485_v2  ;;  %v317_v49 = vrot.slane %v1635_v37, %v1487_v3 }
  0x74   : > { %v1660_v50 = vsel %vm370_vm2, %v860_v40, %v874_v45  ;;  %v1663_v51 = vsel %vm370_vm2, %v864_v41, %v877_v46  ;;  %v273_v52 = vrot.slane %v233_v44, %v1485_v2  ;;  %v277_v53 = vrot.slane %v237_v13, %v1485_v2 }
  0x75   : > { %v889_v54 = vmul.f32 %v1660_v50, %v780_v30  ;;  %v890_v57 = vmul.f32 %v1663_v51, %v784_v7  ;;  %v329_v58 = vrot.slane %v1643_v43, %v1485_v2  ;;  %v333_v59 = vrot.slane %v1643_v43, %v1487_v3 }
  0x76   : > { %v345_v60 = vrot.slane %v1651_v47, %v1485_v2  ;;  %v349_v61 = vrot.slane %v1651_v47, %v1487_v3  ;;  %v361_v62 = vrot.slane %v1653_v48, %v1485_v2  ;;  %v365_v63 = vrot.slane %v1653_v48, %v1487_v3 }
  0x77   : > { %v897_v0 = vadd.f32 %v889_v54, %v729_v38  ;;  %v898_v1 = vadd.f32 %v890_v57, %v730_v39  ;;  %v375_v15 = vsel %vm366_vm0, %v329_v58, %v313_v14  ;;  %v378_v16 = vsel %vm366_vm0, %v333_v59, %v317_v49 }
  0x78   : > { %v376_v17 = vsel %vm368_vm1, %v345_v60, %v375_v15  ;;  %v379_v18 = vsel %vm368_vm1, %v349_v61, %v378_v16  ;;  %v412_v19 = vrot.slane %v1625_v31, %v1489_v4  ;;  %v416_v20 = vrot.slane %v1625_v31, %v1491_v5 }
  0x79   : > { %v913_v21 = vcombine.low %v897_v0, %v898_v1  ;;  %v1690_v22 = vsel %vm370_vm2, %v361_v62, %v376_v17  ;;  %v1693_v23 = vsel %vm370_vm2, %v365_v63, %v379_v18  ;;  %v484_v26 = vrot.slane %v1635_v37, %v1489_v4 }
  0x7a   : > { %v387_v27 = vmul.f32 %v1690_v22, %v273_v52  ;;  %v388_v28 = vmul.f32 %v1693_v23, %v277_v53  ;;  %v452_v29 = vrot.slane %v412_v19, %v1489_v4  ;;  %v456_v30 = vrot.slane %v416_v20, %v1489_v4 }
  0x7b   : > { %921 = vst [vmem:[%s1703_s17] sm:$0xff] %v913_v21  ;;  %v488_v7 = vrot.slane %v1635_v37, %v1491_v5  ;;  %v500_v32 = vrot.slane %v1643_v43, %v1489_v4  ;;  %v504_v33 = vrot.slane %v1643_v43, %v1491_v5  ;;  %v516_v34 = vrot.slane %v1651_v47, %v1489_v4 }
  0x7c   : > { %v520_v8 = vrot.slane %v1651_v47, %v1491_v5  ;;  %v532_v38 = vrot.slane %v1653_v48, %v1489_v4  ;;  %v536_v39 = vrot.slane %v1653_v48, %v1491_v5  ;;  %v580_v40 = vrot.slane %v1625_v31, %v1493_v6 }
  0x7d   : > { %v543_v41 = vsel %vm366_vm0, %v500_v32, %v484_v26  ;;  %v546_v42 = vsel %vm366_vm0, %v504_v33, %v488_v7  ;;  %v584_v9 = vrot.slane %v1625_v31, %v1502_v10  ;;  %v652_v44 = vrot.slane %v1635_v37, %v1493_v6  ;;  %v208_v33 = vld [vmem:[%s1475_s26 + $0x10] sm:$0xff] }
  0x7e   : > { %v544_v13 = vsel %vm368_vm1, %v516_v34, %v543_v41  ;;  %v547_v45 = vsel %vm368_vm1, %v520_v8, %v546_v42  ;;  %v620_v46 = vrot.slane %v580_v40, %v1493_v6  ;;  %v656_v14 = vrot.slane %v1635_v37, %v1502_v10 }
  0x7f   : > { %v1734_v49 = vsel %vm370_vm2, %v532_v38, %v544_v13  ;;  %v1737_v52 = vsel %vm370_vm2, %v536_v39, %v547_v45  ;;  %v624_v53 = vrot.slane %v584_v9, %v1493_v6  ;;  %v668_v54 = vrot.slane %v1643_v43, %v1493_v6 }
  0x80   : > { %v555_v57 = vmul.f32 %v1734_v49, %v452_v29  ;;  %v556_v58 = vmul.f32 %v1737_v52, %v456_v30  ;;  %v672_v59 = vrot.slane %v1643_v43, %v1502_v10  ;;  %v684_v60 = vrot.slane %v1651_v47, %v1493_v6 }
  0x81   : > { %v688_v61 = vrot.slane %v1651_v47, %v1502_v10  ;;  %v700_v62 = vrot.slane %v1653_v48, %v1493_v6  ;;  %v704_v63 = vrot.slane %v1653_v48, %v1502_v10  ;;  %v711_v0 = vsel %vm366_vm0, %v668_v54, %v652_v44 }
  0x82   : > { %v563_v1 = vadd.f32 %v555_v57, %v387_v27  ;;  %v564_v15 = vadd.f32 %v556_v58, %v388_v28  ;;  %v712_v16 = vsel %vm368_vm1, %v684_v60, %v711_v0  ;;  %v714_v17 = vsel %vm366_vm0, %v672_v59, %v656_v14 }
  0x83   : > { %v1758_v18 = vsel %vm370_vm2, %v700_v62, %v712_v16  ;;  %v715_v19 = vsel %vm368_vm1, %v688_v61, %v714_v17  ;;  %v748_v20 = vrot.slane %v1625_v31, %v1504_v11  ;;  %v752_v21 = vrot.slane %v1625_v31, %v1506_v12  ;;  %v209_v62 = vld [vmem:[%s1475_s26 + $0x18] sm:$0xff] }
  0x84   : > { %v1766_v26 = vsel %vm370_vm2, %v704_v63, %v715_v19  ;;  %v723_v27 = vmul.f32 %v1758_v18, %v620_v46  ;;  %v820_v28 = vrot.slane %v1635_v37, %v1504_v11  ;;  %v824_v29 = vrot.slane %v1635_v37, %v1506_v12 }
  0x85   : > { %v724_v30 = vmul.f32 %v1766_v26, %v624_v53  ;;  %v788_v7 = vrot.slane %v748_v20, %v1504_v11  ;;  %v792_v32 = vrot.slane %v752_v21, %v1504_v11  ;;  %v836_v31 = vrot.slane %v1643_v43, %v1504_v11 }
  0x86   : > { %v731_v34 = vadd.f32 %v723_v27, %v563_v1  ;;  %v840_v8 = vrot.slane %v1643_v43, %v1506_v12  ;;  %v852_v38 = vrot.slane %v1651_v47, %v1504_v11  ;;  %v856_v37 = vrot.slane %v1651_v47, %v1506_v12 }
  0x87   : > { %v732_v39 = vadd.f32 %v724_v30, %v564_v15  ;;  %v868_v40 = vrot.slane %v1653_v48, %v1504_v11  ;;  %v872_v41 = vrot.slane %v1653_v48, %v1506_v12  ;;  %v879_v42 = vsel %vm366_vm0, %v836_v31, %v820_v28 }
  0x88   : > { %v880_v9 = vsel %vm368_vm1, %v852_v38, %v879_v42  ;;  %v882_v43 = vsel %vm366_vm0, %v840_v8, %v824_v29  ;;  %v241_v44 = vrot.slane %v208_v33, %v1485_v2  ;;  %v245_v13 = vrot.slane %v208_v33, %v1487_v3 }
  0x89   : > { %v1795_v47 = vsel %vm370_vm2, %v868_v40, %v880_v9  ;;  %v883_v45 = vsel %vm368_vm1, %v856_v37, %v882_v43  ;;  %v420_v46 = vrot.slane %v208_v33, %v1489_v4  ;;  %v424_v48 = vrot.slane %v208_v33, %v1491_v5 }
  0x8a   : > { %v1801_v14 = vsel %vm370_vm2, %v872_v41, %v883_v45  ;;  %v891_v53 = vmul.f32 %v1795_v47, %v788_v7  ;;  %v281_v54 = vrot.slane %v241_v44, %v1485_v2  ;;  %v285_v57 = vrot.slane %v245_v13, %v1485_v2 }
  0x8b   : > { %v892_v58 = vmul.f32 %v1801_v14, %v792_v32  ;;  %v460_v59 = vrot.slane %v420_v46, %v1489_v4  ;;  %v464_v60 = vrot.slane %v424_v48, %v1489_v4  ;;  %v588_v61 = vrot.slane %v208_v33, %v1493_v6 }
  0x8c   : > { %v899_v63 = vadd.f32 %v891_v53, %v731_v34  ;;  %v389_v0 = vmul.f32 %v1547_v35, %v281_v54  ;;  %v390_v1 = vmul.f32 %v1550_v36, %v285_v57  ;;  %v592_v15 = vrot.slane %v208_v33, %v1502_v10 }
  0x8d   : > { %v900_v16 = vadd.f32 %v892_v58, %v732_v39  ;;  %v557_v17 = vmul.f32 %v1581_v55, %v460_v59  ;;  %v558_v19 = vmul.f32 %v1584_v56, %v464_v60  ;;  %v628_v20 = vrot.slane %v588_v61, %v1493_v6 }
  0x8e   : > { %v632_v35 = vrot.slane %v592_v15, %v1493_v6  ;;  %v756_v36 = vrot.slane %v208_v33, %v1504_v11  ;;  %v760_v27 = vrot.slane %v208_v33, %v1506_v12  ;;  %v249_v28 = vrot.slane %v209_v62, %v1485_v2 }
  0x8f   : > { %v914_v55 = vcombine.low %v899_v63, %v900_v16  ;;  %v565_v29 = vadd.f32 %v557_v17, %v389_v0  ;;  %v566_v30 = vadd.f32 %v558_v19, %v390_v1  ;;  %v725_v56 = vmul.f32 %v1611_v24, %v628_v20 }
  0x90   : > { %v726_v7 = vmul.f32 %v1614_v25, %v632_v35  ;;  %v796_v32 = vrot.slane %v756_v36, %v1504_v11  ;;  %v800_v31 = vrot.slane %v760_v27, %v1504_v11  ;;  %v253_v34 = vrot.slane %v209_v62, %v1487_v3 }
  0x91   : > { %925 = vst.msk [vmem:[%s1703_s17 + $0x8] sm:$0xff] %vm1819_vm5, %v914_v55  ;;  %v733_v8 = vadd.f32 %v725_v56, %v565_v29  ;;  %v289_v33 = vrot.slane %v249_v28, %v1485_v2  ;;  %v428_v38 = vrot.slane %v209_v62, %v1489_v4  ;;  %v432_v37 = vrot.slane %v209_v62, %v1491_v5 }
  0x92   : > { %v734_v39 = vadd.f32 %v726_v7, %v566_v30  ;;  %v893_v24 = vmul.f32 %v1660_v50, %v796_v32  ;;  %v894_v25 = vmul.f32 %v1663_v51, %v800_v31  ;;  %v293_v40 = vrot.slane %v253_v34, %v1485_v2 }
  0x93   : > { %v391_v41 = vmul.f32 %v1690_v22, %v289_v33  ;;  %v468_v3 = vrot.slane %v428_v38, %v1489_v4  ;;  %v472_v42 = vrot.slane %v432_v37, %v1489_v4  ;;  %v596_v9 = vrot.slane %v209_v62, %v1493_v6 }
  0x94   : > { %v901_v43 = vadd.f32 %v893_v24, %v733_v8  ;;  %v902_v44 = vadd.f32 %v894_v25, %v734_v39  ;;  %v392_v5 = vmul.f32 %v1693_v23, %v293_v40  ;;  %v600_v50 = vrot.slane %v209_v62, %v1502_v10 }
  0x95   : > { %v559_v51 = vmul.f32 %v1734_v49, %v468_v3  ;;  %v560_v2 = vmul.f32 %v1737_v52, %v472_v42  ;;  %v636_v22 = vrot.slane %v596_v9, %v1493_v6  ;;  %v764_v13 = vrot.slane %v209_v62, %v1504_v11 }
  0x96   : > { %v915_v4 = vcombine.low %v901_v43, %v902_v44  ;;  %v640_v45 = vrot.slane %v600_v50, %v1493_v6  ;;  %v768_v46 = vrot.slane %v209_v62, %v1506_v12 }
  0x97   : > { %v567_v48 = vadd.f32 %v559_v51, %v391_v41  ;;  %v568_v53 = vadd.f32 %v560_v2, %v392_v5  ;;  %v727_v23 = vmul.f32 %v1758_v18, %v636_v22  ;;  %v804_v10 = vrot.slane %v764_v13, %v1504_v11 }
  0x98   : > { %926 = vst [vmem:[%s1703_s17 + $0x10] sm:$0xff] %v915_v4  ;;  %v728_v49 = vmul.f32 %v1766_v26, %v640_v45  ;;  %v808_v52 = vrot.slane %v768_v46, %v1504_v11 }
  0x99   : > { %v735_v54 = vadd.f32 %v727_v23, %v567_v48  ;;  %v895_v6 = vmul.f32 %v1795_v47, %v804_v10 }
  0x9a   : > { %v736_v57 = vadd.f32 %v728_v49, %v568_v53  ;;  %v896_v12 = vmul.f32 %v1801_v14, %v808_v52 }
  0x9b   : > { %v903_v58 = vadd.f32 %v895_v6, %v735_v54 }
  0x9c   : > { %v904_v18 = vadd.f32 %v896_v12, %v736_v57 }
  0x9e   : > { %v916_v11 = vcombine.low %v903_v58, %v904_v18 }
  0xa0   : > { %927 = vst.msk [vmem:[%s1703_s17 + $0x18] sm:$0xff] %vm1819_vm5, %v916_v11 }
  0xa1   : > { %1212 = shalt.err (!%p1209_p8)
}
  0xa2   : > { %s1213_s28 = scalar_lea.hbm %s1867_s5, 512  ;;  %s1217_s18 = scalar_lea.hbm %s1921_s2, 1024 }
  0xa3   : > { %p1214_p0 = scmp.ne.s32.totalorder %s1867_s5, %s1213_s28  ;;  %p1218_p12 = scmp.lt.u32.totalorder %s1867_s5, %s1921_s2 }
  0xa4   : > { %p1219_p5 = scmp.lt.u32.totalorder %s1217_s18, %s1213_s28  ;;  %p1221_p9 = scmp.lt.u32.totalorder %s1213_s28, %s1867_s5 }
  0xa5   : > { %p1215_p2 = pnand %p1214_p0, %p1942_p11 }
  0xa6   : > { %p1220_p10 = por %p1219_p5, %p1218_p12 }
  0xa7   : > { %p1216_p7 = pneg %p1215_p2 }
  0xa8   : > { %p1222_p13 = por %p1221_p9, %p1220_p10 }
  0xaa   : > { %p1223_p4 = pnand %p1222_p13, %p1216_p7 }
  0xac   : > { %1226 = shalt.err (!%p1223_p4)
}
  0xad   : > { %s1293_s26 = smov 256   ;;  %s1294_s17 = smov 512  }
  0xae   : > { %s1295_s22 = smov 16  }
  0xaf   : > { %1068 = dma.vmem_to_hbm [thread:$0]  (%p1942_p11), %s1862_s19, 512, %s1867_s5, %s929_s6, %s1293_s26, %s1294_s17, %s1295_s22  }
  0xb0 PF: > { %s959_s8 = sand.u32 1, %s1265_s9   ;;  %p1943_p1 = scmp.ne.s32.totalorder %s1932_s21, 0 }
  0xb1   : > { %p1944_p3 = scmp.ge.s32.totalorder %s1285_s14, 2  ;;  %s960_s15 = scalar_lea.sflag [#allocation4], %s959_s8 }
  0xb3   : > { %p1079_p6 = pnand %p1944_p3, %p1943_p1 }
  0xb5   : > { %1260 = dma.done.wait (!%p1079_p6), %s960_s15, 512  }
  0xb6   : > { %1262 = vsyncadd (!%p1079_p6), %s960_s15, 4294966784  ;;  %s19_s14 = sadd.s32 1, %s1285_s14   ;;  %s1945_s9 = smov %s1269_s10 }
  0xb7   : > { %p16_p8 = scmp.ge.s32.totalorder %s19_s14, 4   ;;  %s1946_s10 = smov %s1273_s11 }
  0xb8   : > { %s1947_s11 = smov %s1432_s7  ;;  %s1948_s12 = smov %s1281_s13 }
  0xb9   : > { %s1949_s13 = smov %s1951_s27  ;;  %18 = sbr.rel (!%p16_p8) target bundleno = 7 (0x7), region = 78 }
  0xc0   :  { %965 = vsyncpa [#allocation3], 1 }
  0xc1   :  { %967 = vsyncpa [#allocation3 + $0x1], 1 }
  0xc2   :  { %968 = vsyncpa [#allocation6], 1 }
  0xc3   :  { %969 = vsyncpa [#allocation4], 1 }
  0xc4   :  { %971 = vsyncpa [#allocation4 + $0x1], 1 }

</bundles_post_ra>
